<compile_context>
chip_gen: v5e
topology: v5e:2x2
jax: 0.10.0
libtpu: 0.0.40
codegen_flags: <defaults>
</compile_context>

<pallas_src>
import jax
import jax.numpy as jnp
from jax.experimental import pallas as pl
from jax.experimental.pallas import tpu as pltpu


def _actor_kernel(x_ref, w_ref, b_ref, out_ref):
    # x_ref: (tb, H)   w_ref: (4, H, H)   b_ref: (4, H)   out_ref: (tb, H)
    b = b_ref[...]                      # load bias slab once
    h = x_ref[...]
    # Static unroll over the 4 fused (matmul + bias + relu) stages.
    for i in range(4):
        h = jnp.dot(h, w_ref[i], preferred_element_type=jnp.float32)
        h = jnp.maximum(h + b[i:i + 1, :], 0.0)
    out_ref[...] = h.astype(out_ref.dtype)


def _round_up(x, m):
    return (x + m - 1) // m * m


def init_actor_params(key, state_dim, action_dim, hidden_dim):
    """nn.Linear-style init (U[-1/sqrt(fan_in), 1/sqrt(fan_in)]).
    Weights stored pre-transposed: [in_features, out_features]."""
    dims = [(state_dim, hidden_dim), (hidden_dim, hidden_dim),
            (hidden_dim, hidden_dim), (hidden_dim, action_dim)]
    names = ["fci", "fc1", "fc2", "fcf"]
    params = {}
    for name, (fan_in, fan_out) in zip(names, dims):
        key, kw, kb = jax.random.split(key, 3)
        bound = 1.0 / jnp.sqrt(jnp.float32(fan_in))
        w = jax.random.uniform(kw, (fan_in, fan_out), jnp.float32, -bound, bound)
        b = jax.random.uniform(kb, (fan_out,), jnp.float32, -bound, bound)
        params[name] = (w, b)
    return params


def pack_actor_params(params):
    """Pack per-layer (W, b) into two slabs: W_slab (4, H, H), b_slab (4, H).
    fci is zero-padded on its input rows, fcf on its output cols/bias, so the
    padded computation is exactly equivalent after slicing [:, :action_dim]."""
    wi, bi = params["fci"]
    w1, b1 = params["fc1"]
    w2, b2 = params["fc2"]
    wf, bf = params["fcf"]
    state_dim, H = wi.shape
    action_dim = wf.shape[1]
    assert state_dim <= H and action_dim <= H
    assert w1.shape == (H, H) and w2.shape == (H, H)

    wi_p = jnp.zeros((H, H), jnp.float32).at[:state_dim, :].set(wi)
    wf_p = jnp.zeros((H, H), jnp.float32).at[:, :action_dim].set(wf)
    bf_p = jnp.zeros((H,), jnp.float32).at[:action_dim].set(bf)

    w_slab = jnp.stack([wi_p, w1, w2, wf_p]).astype(jnp.float32)   # (4, H, H)
    b_slab = jnp.stack([bi, b1, b2, bf_p]).astype(jnp.float32)     # (4, H)
    return {"w": w_slab, "b": b_slab,
            "state_dim": int(state_dim), "action_dim": int(action_dim)}


def actor_forward(state, packed, *, block_b=256):
    """state: [B, state_dim] float32.  packed: output of pack_actor_params."""
    w_slab, b_slab = packed["w"], packed["b"]
    state_dim, action_dim = packed["state_dim"], packed["action_dim"]
    H = w_slab.shape[-1]
    B = state.shape[0]

    # Sublane-align the batch, choose a row block (<= block_b), pad batch to it.
    B8 = _round_up(max(B, 1), 8)
    tb = min(_round_up(block_b, 8), B8)
    B_pad = _round_up(B8, tb)

    # Zero-pad the input to (B_pad, H): padded feature columns hit zero weight
    # rows, padded batch rows are sliced off below.
    x = jnp.zeros((B_pad, H), jnp.float32).at[:B, :state_dim].set(
        state.astype(jnp.float32))

    out = pl.pallas_call(
        _actor_kernel,
        out_shape=jax.ShapeDtypeStruct((B_pad, H), jnp.float32),
        grid=(B_pad // tb,),
        in_specs=[
            pl.BlockSpec((tb, H), lambda i: (i, 0)),          # activations: tiled over batch
            pl.BlockSpec((4, H, H), lambda i: (0, 0, 0)),     # weight slab: resident
            pl.BlockSpec((4, H), lambda i: (0, 0)),           # bias slab: resident
        ],
        out_specs=pl.BlockSpec((tb, H), lambda i: (i, 0)),
        compiler_params=pltpu.CompilerParams(
            dimension_semantics=("parallel",)),               # shard batch across TCs (v7x)
    )(x, w_slab, b_slab)

    return out[:B, :action_dim]


def actor_forward_ref(state, params):
    """Pure-JAX reference for correctness checking."""
    h = state
    for name in ["fci", "fc1", "fc2", "fcf"]:
        w, b = params[name]
        h = jnp.maximum(h @ w + b, 0.0)
    return h


if __name__ == "__main__":
    key = jax.random.PRNGKey(0)

    # king-move windy gridworld: state = (row, col), 8 actions
    batch, state_dim, action_dim, hidden_dim = 8, 2, 8, 32

    kparams, kstate, kbig = jax.random.split(key, 3)
    params = init_actor_params(kparams, state_dim, action_dim, hidden_dim)
    packed = pack_actor_params(params)

    # Small per-step batch (single grid step, no padding waste).
    state = jax.random.uniform(kstate, (batch, state_dim), jnp.float32, 0.0, 7.0)
    out = jax.block_until_ready(actor_forward(state, packed))
    ref = actor_forward_ref(state, params)
    assert out.shape == (batch, action_dim)
    assert jnp.allclose(out, ref, atol=1e-5, rtol=1e-5), "mismatch vs JAX reference (B=8)"

    # Larger, non-8-aligned batch exercises the parallel batch grid (grid=(2,)).
    big_b = 300
    big_state = jax.random.uniform(kbig, (big_b, state_dim), jnp.float32, 0.0, 7.0)
    big_out = jax.block_until_ready(actor_forward(big_state, packed))
    big_ref = actor_forward_ref(big_state, params)
    assert big_out.shape == (big_b, action_dim)
    assert jnp.allclose(big_out, big_ref, atol=1e-5, rtol=1e-5), "mismatch vs JAX reference (B=300)"

    print("KERNEL_OK")
</pallas_src>

<mosaic_0001>
module attributes {stable_mosaic.version = 11 : i64} {
  func.func @_actor_kernel(%arg0: i32, %arg1: memref<8x32xf32, #tpu.memory_space<vmem>>, %arg2: memref<4x32x32xf32, #tpu.memory_space<vmem>>, %arg3: memref<4x32xf32, #tpu.memory_space<vmem>>, %arg4: memref<8x32xf32, #tpu.memory_space<vmem>>) attributes {dimension_semantics = [#tpu.dimension_semantics<parallel>], iteration_bounds = array<i64: 1>, scalar_prefetch = 0 : i64, scratch_operands = 0 : i64, tpu.core_type = #tpu.core_type<tc>, window_params = [{transform_indices = @transform_0, window_bounds = array<i64: 8, 32>}, {pipeline_mode = #tpu.pipeline_mode<synchronous>, transform_indices = @transform_1, window_bounds = array<i64: 4, 32, 32>}, {pipeline_mode = #tpu.pipeline_mode<synchronous>, transform_indices = @transform_2, window_bounds = array<i64: 4, 32>}, {transform_indices = @transform_3, window_bounds = array<i64: 8, 32>}]} {
    %c0 = arith.constant 0 : index
    %c0_0 = arith.constant 0 : index
    %0 = vector.load %arg3[%c0, %c0_0] : memref<4x32xf32, #tpu.memory_space<vmem>>, vector<4x32xf32>
    %c0_1 = arith.constant 0 : index
    %c0_2 = arith.constant 0 : index
    %1 = vector.load %arg1[%c0_1, %c0_2] : memref<8x32xf32, #tpu.memory_space<vmem>>, vector<8x32xf32>
    %c0_3 = arith.constant 0 : index
    %c0_4 = arith.constant 0 : index
    %c0_5 = arith.constant 0 : index
    %2 = vector.load %arg2[%c0_3, %c0_4, %c0_5] : memref<4x32x32xf32, #tpu.memory_space<vmem>>, vector<1x32x32xf32>
    %3 = vector.shape_cast %2 : vector<1x32x32xf32> to vector<32x32xf32>
    %cst = arith.constant dense<0.000000e+00> : vector<8x32xf32>
    %4 = tpu.matmul %1, %3, %cst {dimension_numbers = #tpu.dot_dimension_numbers<[1], [0], [0], [1], [0, 0, 1, 1], [], []>} : vector<8x32xf32>, vector<32x32xf32>, vector<8x32xf32> -> vector<8x32xf32>
    %5 = vector.extract_strided_slice %0 {offsets = [0, 0], sizes = [1, 32], strides = [1, 1]} : vector<4x32xf32> to vector<1x32xf32>
    %6 = vector.broadcast %5 : vector<1x32xf32> to vector<8x32xf32>
    %7 = arith.addf %4, %6 : vector<8x32xf32>
    %cst_6 = arith.constant 0.000000e+00 : f32
    %8 = vector.broadcast %cst_6 : f32 to vector<8x32xf32>
    %9 = arith.maximumf %7, %8 : vector<8x32xf32>
    %c1 = arith.constant 1 : index
    %c0_7 = arith.constant 0 : index
    %c0_8 = arith.constant 0 : index
    %10 = vector.load %arg2[%c1, %c0_7, %c0_8] : memref<4x32x32xf32, #tpu.memory_space<vmem>>, vector<1x32x32xf32>
    %11 = vector.shape_cast %10 : vector<1x32x32xf32> to vector<32x32xf32>
    %cst_9 = arith.constant dense<0.000000e+00> : vector<8x32xf32>
    %12 = tpu.matmul %9, %11, %cst_9 {dimension_numbers = #tpu.dot_dimension_numbers<[1], [0], [0], [1], [0, 0, 1, 1], [], []>} : vector<8x32xf32>, vector<32x32xf32>, vector<8x32xf32> -> vector<8x32xf32>
    %13 = vector.extract_strided_slice %0 {offsets = [1, 0], sizes = [1, 32], strides = [1, 1]} : vector<4x32xf32> to vector<1x32xf32>
    %14 = vector.broadcast %13 : vector<1x32xf32> to vector<8x32xf32>
    %15 = arith.addf %12, %14 : vector<8x32xf32>
    %cst_10 = arith.constant 0.000000e+00 : f32
    %16 = vector.broadcast %cst_10 : f32 to vector<8x32xf32>
    %17 = arith.maximumf %15, %16 : vector<8x32xf32>
    %c2 = arith.constant 2 : index
    %c0_11 = arith.constant 0 : index
    %c0_12 = arith.constant 0 : index
    %18 = vector.load %arg2[%c2, %c0_11, %c0_12] : memref<4x32x32xf32, #tpu.memory_space<vmem>>, vector<1x32x32xf32>
    %19 = vector.shape_cast %18 : vector<1x32x32xf32> to vector<32x32xf32>
    %cst_13 = arith.constant dense<0.000000e+00> : vector<8x32xf32>
    %20 = tpu.matmul %17, %19, %cst_13 {dimension_numbers = #tpu.dot_dimension_numbers<[1], [0], [0], [1], [0, 0, 1, 1], [], []>} : vector<8x32xf32>, vector<32x32xf32>, vector<8x32xf32> -> vector<8x32xf32>
    %21 = vector.extract_strided_slice %0 {offsets = [2, 0], sizes = [1, 32], strides = [1, 1]} : vector<4x32xf32> to vector<1x32xf32>
    %22 = vector.broadcast %21 : vector<1x32xf32> to vector<8x32xf32>
    %23 = arith.addf %20, %22 : vector<8x32xf32>
    %cst_14 = arith.constant 0.000000e+00 : f32
    %24 = vector.broadcast %cst_14 : f32 to vector<8x32xf32>
    %25 = arith.maximumf %23, %24 : vector<8x32xf32>
    %c3 = arith.constant 3 : index
    %c0_15 = arith.constant 0 : index
    %c0_16 = arith.constant 0 : index
    %26 = vector.load %arg2[%c3, %c0_15, %c0_16] : memref<4x32x32xf32, #tpu.memory_space<vmem>>, vector<1x32x32xf32>
    %27 = vector.shape_cast %26 : vector<1x32x32xf32> to vector<32x32xf32>
    %cst_17 = arith.constant dense<0.000000e+00> : vector<8x32xf32>
    %28 = tpu.matmul %25, %27, %cst_17 {dimension_numbers = #tpu.dot_dimension_numbers<[1], [0], [0], [1], [0, 0, 1, 1], [], []>} : vector<8x32xf32>, vector<32x32xf32>, vector<8x32xf32> -> vector<8x32xf32>
    %29 = vector.extract_strided_slice %0 {offsets = [3, 0], sizes = [1, 32], strides = [1, 1]} : vector<4x32xf32> to vector<1x32xf32>
    %30 = vector.broadcast %29 : vector<1x32xf32> to vector<8x32xf32>
    %31 = arith.addf %28, %30 : vector<8x32xf32>
    %cst_18 = arith.constant 0.000000e+00 : f32
    %32 = vector.broadcast %cst_18 : f32 to vector<8x32xf32>
    %33 = arith.maximumf %31, %32 : vector<8x32xf32>
    %c0_19 = arith.constant 0 : index
    %c0_20 = arith.constant 0 : index
    %34 = vector.load %arg4[%c0_19, %c0_20] : memref<8x32xf32, #tpu.memory_space<vmem>>, vector<8x32xf32>
    tpu.vector_store %arg4[%c0_19, %c0_20], %33 {strides = array<i32>} : memref<8x32xf32, #tpu.memory_space<vmem>>, vector<8x32xf32>,
    return
  }
  func.func @transform_0(%arg0: i32) -> (i32, i32) {
    %c0_i32 = arith.constant 0 : i32
    %c0_i32_0 = arith.constant 0 : i32
    return %arg0, %c0_i32 : i32, i32
  }
  func.func @transform_1(%arg0: i32) -> (i32, i32, i32) {
    %c0_i32 = arith.constant 0 : i32
    %c0_i32_0 = arith.constant 0 : i32
    %c0_i32_1 = arith.constant 0 : i32
    %c0_i32_2 = arith.constant 0 : i32
    return %c0_i32, %c0_i32_0, %c0_i32_1 : i32, i32, i32
  }
  func.func @transform_2(%arg0: i32) -> (i32, i32) {
    %c0_i32 = arith.constant 0 : i32
    %c0_i32_0 = arith.constant 0 : i32
    %c0_i32_1 = arith.constant 0 : i32
    return %c0_i32, %c0_i32_0 : i32, i32
  }
  func.func @transform_3(%arg0: i32) -> (i32, i32) {
    %c0_i32 = arith.constant 0 : i32
    %c0_i32_0 = arith.constant 0 : i32
    return %arg0, %c0_i32 : i32, i32
  }
}

</mosaic_0001>

<bundles_post_ra>
// kernel: tpu_custom_call.1
= control target key start
LH: loop header
LB: loop body
LE: loop exit
PB: predicated region body
PF: predicated region fallthrough
CT: control target
= control target key end

     0   :  { %8 = vsyncpa [#allocation3], 0  ;;  %s354_s0 = inlined_call_operand.hbm [shape: f32[8,32], index: 0, kind: input, shape index: {}]   ;;  %s355_s1 = inlined_call_operand.hbm [shape: f32[4,32,32], index: 1, kind: input, shape index: {}]   ;;  %s356_s2 = inlined_call_operand.hbm [shape: f32[4,32], index: 2, kind: input, shape index: {}]   ;;  %s357_s3 = inlined_call_operand.hbm [shape: f32[8,32], index: 3, kind: output, shape index: {}]  }
   0x1   :  { %9 = vsyncpa [#allocation6], 0  ;;  %s26_s14 = sshll.u32 %s355_s1, 4  ;;  %s27_s14 = int_to_ptr.hbm [resolvable:$true] %s26_s14 }
   0x2   :  { %10 = vsyncpa [#allocation4], 0  ;;  %s311_s15 = smov [#allocation5]   ;;  %s16_s19 = sshll.u32 %s354_s0, 4  ;;  %s17_s19 = int_to_ptr.hbm [resolvable:$true] %s16_s19 }
   0x3   :  { %s28_s16 = sshll.u32 %s311_s15, 4  ;;  %s312_s20 = smov 128   ;;  %s29_s16 = int_to_ptr.vmem [resolvable:$true] %s28_s16 }
   0x4   :  { %s313_s21 = smov 8   ;;  %s314_s22 = smov [#allocation2]  }
   0x5   :  { %34 = dma.hbm_to_vmem [thread:$0]  %s27_s14, 2048, %s29_s16, [#allocation6], %s312_s20, %s312_s20, %s313_s21  }
   0x6   :  { %s18_s23 = sshll.u32 %s314_s22, 4  ;;  %s40_s26 = sshll.u32 %s356_s2, 4  ;;  %s19_s23 = int_to_ptr.vmem [resolvable:$true] %s18_s23  ;;  %s41_s26 = int_to_ptr.hbm [resolvable:$true] %s40_s26 }
   0x7   :  { %21 = dma.hbm_to_vmem [thread:$0]  %s17_s19, 128, %s19_s23, [#allocation3]  }
   0x8   :  { %s315_s1 = smov [#allocation7]  }
   0x9   :  { %s42_s27 = sshll.u32 %s315_s1, 4  ;;  %s43_s27 = int_to_ptr.vmem [resolvable:$true] %s42_s27 }
   0xa   :  { %45 = dma.hbm_to_vmem [thread:$0]  %s41_s26, 64, %s43_s27, [#allocation6]  }
   0xb   :  { %305 = dma.done.wait [#allocation3], 128  }
   0xc   :  { %306 = vsyncadd [#allocation3], 4294967168 }
   0xd   :  { %307 = dma.done.wait [#allocation6], 2112  }
   0xe   :  { %308 = vsyncadd [#allocation6], 4294965184  ;;  %v63_v0 = vld [vmem:[#allocation5 + $0x18] sm:$0xff]  ;;  %v62_v1 = vld [vmem:[#allocation5 + $0x10] sm:$0xff]  ;;  %vm65_vm0 = vcmask 261120   ;;  %s316_s0 = smov [#allocation8]  }
   0xf   :  { %81 = vmatpush.msra.mxu0 %v63_v0  ;;  %v94_v2 = vld [vmem:[#allocation5 + $0x38] sm:$0xff]  ;;  %v61_v3 = vld [vmem:[#allocation5 + $0x8] sm:$0xff]  ;;  %v60_v4 = vld [vmem:[#allocation5] sm:$0xff]  ;;  %s186_s2 = sshll.u32 %s316_s0, 4  ;;  %s188_s30 = sshll.u32 %s357_s3, 4  ;;  %s187_s2 = int_to_ptr.vmem [resolvable:$true] %s186_s2  ;;  %s189_s30 = int_to_ptr.hbm [resolvable:$true] %s188_s30 }
  0x10   :  { %111 = vmatpush.msra.mxu1 %v94_v2  ;;  %v59_v5 = vld [vmem:[#allocation2] sm:$0xff]  ;;  %v93_v6 = vld [vmem:[#allocation5 + $0x30] sm:$0xff]  ;;  %v92_v7 = vld [vmem:[#allocation5 + $0x28] sm:$0xff] }
  0x11   :  { %82 = vmatpush.msra.mxu0 %v62_v1  ;;  %v91_v8 = vld [vmem:[#allocation5 + $0x20] sm:$0xff]  ;;  %v124_v9 = vld [vmem:[#allocation5 + $0x58] sm:$0xff]  ;;  %v123_v15 = vld [vmem:[#allocation5 + $0x50] sm:$0xff] }
  0x12   :  { %112 = vmatpush.msra.mxu1 %v93_v6  ;;  %141 = vmatpush.msra.mxu2 %v124_v9  ;;  %v58_v10 = vld [vmem:[#allocation7] sm:$0xf]  ;;  %v122_v16 = vld [vmem:[#allocation5 + $0x48] sm:$0xff]  ;;  %v154_v18 = vld [vmem:[#allocation5 + $0x78] sm:$0xff] }
  0x13   :  { %83 = vmatpush.msra.mxu0 %v61_v3  ;;  %v64_v11 = vperm.slane %v58_v10, 0  ;;  %v121_v17 = vld [vmem:[#allocation5 + $0x40] sm:$0xff]  ;;  %171 = vmatpush.msra.mxu3 %v154_v18  ;;  %v95_v19 = vperm.slane %v58_v10, 1  ;;  %v153_v23 = vld [vmem:[#allocation5 + $0x70] sm:$0xff]  ;;  %v152_v24 = vld [vmem:[#allocation5 + $0x68] sm:$0xff]  ;;  %v125_v26 = vperm.slane %v58_v10, 2 }
  0x14   :  { %113 = vmatpush.msra.mxu1 %v92_v7  ;;  %142 = vmatpush.msra.mxu2 %v123_v15  ;;  %v151_v25 = vld [vmem:[#allocation5 + $0x60] sm:$0xff]  ;;  %v155_v30 = vperm.slane %v58_v10, 3 }
  0x15   :  { %84 = vmatpush.msra.mxu0 %v60_v4  ;;  %172 = vmatpush.msra.mxu3 %v153_v23 }
  0x16   :  { %199 = vmatmul.msk.f32.vlgmr.msra.gmra.mxu0 %vm65_vm0, %v59_v5  ;;  %114 = vmatpush.msra.mxu1 %v91_v8 }
  0x17   :  { %143 = vmatpush.msra.mxu2 %v122_v16  ;;  %173 = vmatpush.msra.mxu3 %v152_v24 }
  0x19   :  { %144 = vmatpush.msra.mxu2 %v121_v17  ;;  %174 = vmatpush.msra.mxu3 %v151_v25 }
  0x93   :  { %v86_v12 = vpop.f32.mrf.mxu0 }
  0x94   :  { %v87_v13 = vadd.f32 %v86_v12, %v64_v11 }
  0x96   :  { %v89_v14 = vmax.f32 %v87_v13, 0.0 }
  0x98   :  { %200 = vmatmul.msk.f32.vlgmr.msra.gmra.mxu1 %vm65_vm0, %v89_v14 }
 0x115   :  { %v116_v20 = vpop.f32.mrf.mxu1 }
 0x116   :  { %v117_v21 = vadd.f32 %v116_v20, %v95_v19 }
 0x118   :  { %v119_v22 = vmax.f32 %v117_v21, 0.0 }
 0x11a   :  { %201 = vmatmul.msk.f32.vlgmr.msra.gmra.mxu2 %vm65_vm0, %v119_v22 }
 0x19d   :  { %v146_v27 = vpop.f32.mrf.mxu2 }
 0x19e   :  { %v147_v28 = vadd.f32 %v146_v27, %v125_v26 }
 0x1a0   :  { %v149_v29 = vmax.f32 %v147_v28, 0.0 }
 0x1a2   :  { %202 = vmatmul.msk.f32.vlgmr.msra.gmra.mxu3 %vm65_vm0, %v149_v29 }
 0x225   :  { %v176_v31 = vpop.f32.mrf.mxu3 }
 0x226   :  { %v177_v32 = vadd.f32 %v176_v31, %v155_v30 }
 0x228   :  { %v179_v33 = vmax.f32 %v177_v32, 0.0 }
 0x22a   :  { %180 = vst.msk [vmem:[#allocation8] sm:$0xff] %vm65_vm0, %v179_v33 }
 0x22b   :  { %191 = dma.vmem_to_hbm [thread:$0]  %s187_s2, 128, %s189_s30, [#allocation4]  }
 0x22c   :  { %309 = dma.done.wait [#allocation4], 128  }
 0x22d   :  { %310 = vsyncadd [#allocation4], 4294967168 }
 0x22e   :  { %196 = vsyncpa [#allocation3], 1 }
 0x22f   :  { %197 = vsyncpa [#allocation6], 1 }
 0x230   :  { %198 = vsyncpa [#allocation4], 1 }

</bundles_post_ra>
